<compile_context>
chip_gen: v7x
topology: tpu7x:2x2x1
jax: 0.10.0
libtpu: 0.0.40
codegen_flags: <defaults>
</compile_context>

<pallas_src>
import jax
import jax.numpy as jnp
from jax.experimental import pallas as pl
from jax.experimental.pallas import tpu as pltpu

_LANE = 128
_SUBLANE = 8
_TILE_ALIGN = _LANE * _SUBLANE                 # 1024 elements (one full f32 vreg row-block)
_TARGET_BLOCK_BYTES = 2 * 1024 * 1024          # ~2 MiB per pipeline buffer (safe on v5e/v6e/v7x)


def _normalize_mask_kernel(a_ref, b_ref, x_ref, o_ref):
    # a_ref / b_ref: (C, 1) float32 scale / shift, broadcast over the lane axis.
    # x_ref / o_ref: (C, tile_n) tiles (all channels folded into one block).
    x = x_ref[...]
    norm = x.astype(jnp.float32) * a_ref[...] + b_ref[...]
    o_ref[...] = jnp.where(x == 0, 0.0, norm).astype(o_ref.dtype)


def normalize_excluding_mask(x, mean, std, *, target_block_bytes=_TARGET_BLOCK_BYTES):
    """x: (C, H, W) float array; mean/std: (C,) per-channel parameters."""
    C, H, W = x.shape
    N = H * W
    itemsize = jnp.dtype(x.dtype).itemsize

    # Reciprocal scale / shift computed in float32 (keeps precision for bf16 x).
    std32 = jnp.asarray(std, jnp.float32).reshape(C, 1)
    mean32 = jnp.asarray(mean, jnp.float32).reshape(C, 1)
    a = 1.0 / std32
    b = -mean32 * a

    # Free (contiguous) reshape: no HBM copy, no padding, no output slice.
    xf = x.reshape(C, N)

    # Byte-sized tile over the flattened spatial axis; block carries all C
    # channels.  tile_n is a multiple of 8*128 so interior blocks are fully
    # vreg-dense; the last (possibly ragged) block is masked by Pallas.
    max_tile_n = max(
        _TILE_ALIGN,
        (target_block_bytes // (C * itemsize)) // _TILE_ALIGN * _TILE_ALIGN,
    )
    if N <= max_tile_n:
        tile_n = N                      # block spans the full axis (always legal)
    else:
        tile_n = max_tile_n             # multiple of 1024; grid handles the tail
    n_tiles = pl.cdiv(N, tile_n)

    out = pl.pallas_call(
        _normalize_mask_kernel,
        out_shape=jax.ShapeDtypeStruct((C, N), x.dtype),
        grid=(n_tiles,),
        in_specs=[
            pl.BlockSpec((C, 1), lambda t: (0, 0)),        # a: (C, 1) f32, resident
            pl.BlockSpec((C, 1), lambda t: (0, 0)),        # b: (C, 1) f32, resident
            pl.BlockSpec((C, tile_n), lambda t: (0, t)),   # x tile, all channels
        ],
        out_specs=pl.BlockSpec((C, tile_n), lambda t: (0, t)),
        compiler_params=pltpu.CompilerParams(
            dimension_semantics=("parallel",)),
    )(a, b, xf)

    return out.reshape(C, H, W)


def _reference(x, mean, std):
    # Original PyTorch semantics: build 0/1 mask, normalize, multiply.
    mean = jnp.asarray(mean, jnp.float32)[:, None, None]
    std = jnp.asarray(std, jnp.float32)[:, None, None]
    mask = jnp.where(x == 0, jnp.zeros_like(x), jnp.ones_like(x))
    return (((x - mean) / std) * mask).astype(x.dtype)


if __name__ == "__main__":
    key = jax.random.PRNGKey(0)

    # Primary small test: (C, H, W) = (4, 16, 16)
    C, H, W = 4, 16, 16
    x = jax.random.uniform(key, (C, H, W), dtype=jnp.float32)
    # Zero out a region to emulate masked pixels that must remain exactly zero.
    x = x.at[:, :4, :6].set(0.0)
    mean = jnp.array([0.485, 0.456, 0.406, 0.5], dtype=jnp.float32)
    std = jnp.array([0.229, 0.224, 0.225, 0.25], dtype=jnp.float32)

    out = jax.block_until_ready(normalize_excluding_mask(x, mean, std))
    ref = _reference(x, mean, std)
    assert out.shape == (C, H, W)
    assert jnp.allclose(out, ref, atol=1e-5, rtol=1e-5)
    assert bool(jnp.all(out[:, :4, :6] == 0.0))       # masked pixels exactly zero

    # Secondary test: non-128-aligned spatial size (single full-extent block).
    C2, H2, W2 = 3, 20, 37
    x2 = jax.random.uniform(jax.random.PRNGKey(0), (C2, H2, W2), dtype=jnp.float32)
    x2 = x2.at[:, 5:9, 10:20].set(0.0)
    mean2 = jnp.array([0.485, 0.456, 0.406], dtype=jnp.float32)
    std2 = jnp.array([0.229, 0.224, 0.225], dtype=jnp.float32)
    out2 = jax.block_until_ready(normalize_excluding_mask(x2, mean2, std2))
    ref2 = _reference(x2, mean2, std2)
    assert out2.shape == (C2, H2, W2)
    assert jnp.allclose(out2, ref2, atol=1e-5, rtol=1e-5)
    assert bool(jnp.all(out2[:, 5:9, 10:20] == 0.0))

    # Third test: force the multi-tile + ragged-last-block path with a tiny
    # tile budget (N = 2560 elems, tile_n = 1024 -> 3 blocks, last one ragged).
    C3, H3, W3 = 3, 40, 64
    x3 = jax.random.uniform(jax.random.PRNGKey(0), (C3, H3, W3), dtype=jnp.float32)
    x3 = x3.at[:, 30:, 50:].set(0.0)
    out3 = jax.block_until_ready(
        normalize_excluding_mask(x3, mean2, std2, target_block_bytes=16 * 1024))
    ref3 = _reference(x3, mean2, std2)
    assert out3.shape == (C3, H3, W3)
    assert jnp.allclose(out3, ref3, atol=1e-5, rtol=1e-5)
    assert bool(jnp.all(out3[:, 30:, 50:] == 0.0))

    print("KERNEL_OK")
</pallas_src>

<mosaic_0001>
module attributes {stable_mosaic.version = 11 : i64} {
  func.func @_normalize_mask_kernel(%arg0: i32, %arg1: memref<4x1xf32, #tpu.memory_space<vmem>>, %arg2: memref<4x1xf32, #tpu.memory_space<vmem>>, %arg3: memref<4x256xf32, #tpu.memory_space<vmem>>, %arg4: memref<4x256xf32, #tpu.memory_space<vmem>>) attributes {dimension_semantics = [#tpu.dimension_semantics<parallel>], iteration_bounds = array<i64: 1>, scalar_prefetch = 0 : i64, scratch_operands = 0 : i64, tpu.core_type = #tpu.core_type<tc>, window_params = [{pipeline_mode = #tpu.pipeline_mode<synchronous>, transform_indices = @transform_0, window_bounds = array<i64: 4, 1>}, {pipeline_mode = #tpu.pipeline_mode<synchronous>, transform_indices = @transform_1, window_bounds = array<i64: 4, 1>}, {transform_indices = @transform_2, window_bounds = array<i64: 4, 256>}, {transform_indices = @transform_3, window_bounds = array<i64: 4, 256>}]} {
    %c0 = arith.constant 0 : index
    %c0_0 = arith.constant 0 : index
    %0 = vector.load %arg3[%c0, %c0_0] : memref<4x256xf32, #tpu.memory_space<vmem>>, vector<4x256xf32>
    %c0_1 = arith.constant 0 : index
    %c0_2 = arith.constant 0 : index
    %1 = vector.load %arg1[%c0_1, %c0_2] : memref<4x1xf32, #tpu.memory_space<vmem>>, vector<4x1xf32>
    %2 = vector.broadcast %1 : vector<4x1xf32> to vector<4x256xf32>
    %3 = arith.mulf %0, %2 : vector<4x256xf32>
    %c0_3 = arith.constant 0 : index
    %c0_4 = arith.constant 0 : index
    %4 = vector.load %arg2[%c0_3, %c0_4] : memref<4x1xf32, #tpu.memory_space<vmem>>, vector<4x1xf32>
    %5 = vector.broadcast %4 : vector<4x1xf32> to vector<4x256xf32>
    %6 = arith.addf %3, %5 : vector<4x256xf32>
    %cst = arith.constant 0.000000e+00 : f32
    %7 = vector.broadcast %cst : f32 to vector<4x256xf32>
    %8 = arith.cmpf oeq, %0, %7 : vector<4x256xf32>
    %cst_5 = arith.constant 0.000000e+00 : f32
    %9 = vector.broadcast %cst_5 : f32 to vector<4x256xf32>
    %10 = arith.select %8, %9, %6 : vector<4x256xi1>, vector<4x256xf32>
    %c0_6 = arith.constant 0 : index
    %c0_7 = arith.constant 0 : index
    %11 = vector.load %arg4[%c0_6, %c0_7] : memref<4x256xf32, #tpu.memory_space<vmem>>, vector<4x256xf32>
    tpu.vector_store %arg4[%c0_6, %c0_7], %10 {strides = array<i32>} : memref<4x256xf32, #tpu.memory_space<vmem>>, vector<4x256xf32>,
    return
  }
  func.func @transform_0(%arg0: i32) -> (i32, i32) {
    %c0_i32 = arith.constant 0 : i32
    %c0_i32_0 = arith.constant 0 : i32
    %c0_i32_1 = arith.constant 0 : i32
    return %c0_i32, %c0_i32_0 : i32, i32
  }
  func.func @transform_1(%arg0: i32) -> (i32, i32) {
    %c0_i32 = arith.constant 0 : i32
    %c0_i32_0 = arith.constant 0 : i32
    %c0_i32_1 = arith.constant 0 : i32
    return %c0_i32, %c0_i32_0 : i32, i32
  }
  func.func @transform_2(%arg0: i32) -> (i32, i32) {
    %c0_i32 = arith.constant 0 : i32
    %c0_i32_0 = arith.constant 0 : i32
    return %c0_i32, %arg0 : i32, i32
  }
  func.func @transform_3(%arg0: i32) -> (i32, i32) {
    %c0_i32 = arith.constant 0 : i32
    %c0_i32_0 = arith.constant 0 : i32
    return %c0_i32, %arg0 : i32, i32
  }
}

</mosaic_0001>

<bundles_post_ra>
// kernel: tpu_custom_call.1
= control target key start
LH: loop header
LB: loop body
LE: loop exit
PB: predicated region body
PF: predicated region fallthrough
CT: control target
= control target key end

     0   :  { %v89_v1 = vmov 0   ;;  %s133_s0 = inlined_call_operand.vmem [shape: f32[4,1], index: 0, kind: input, shape index: {}]   ;;  %s134_s1 = inlined_call_operand.vmem [shape: f32[4,1], index: 1, kind: input, shape index: {}]   ;;  %s135_s2 = inlined_call_operand.vmem [shape: f32[4,256], index: 2, kind: input, shape index: {}]   ;;  %s136_s3 = inlined_call_operand.hbm [shape: f32[4,256], index: 3, kind: output, shape index: {}]  }
   0x1   :  { %v16_v0 = vld [vmem:[%s133_s0] sm:$0xf]  ;;  %64 = vset.pattern.permute.xlu0 %v89_v1 }
   0x2   :  { %8 = vsyncpa [#allocation3], 0  ;;  %19 = vperm.xlu0 %64, %v16_v0   ;;  %v30_v2 = vld [vmem:[%s134_s1] sm:$0xf]  ;;  %v90_v3 = vmov 839922192   ;;  %v24_v5 = vlaneseq }
   0x3   :  { %v22_v4 = vunpack.c.l.s4 %v90_v3  ;;  %v15_v11 = vld [vmem:[%s135_s2] sm:$0xff]  ;;  %s91_s0 = smov [#allocation2]  }
   0x4   :  { %v25_v7 = vshrl.u32 %v24_v5, 7  ;;  %s53_s18 = sshll.u32 %s91_s0, 4  ;;  %vm44_vm0 = vcmp.eq.f32.partialorder %v15_v11, 0.0  ;;  %s54_s18 = int_to_ptr.vmem [resolvable:$true] %s53_s18 }
   0x5   :  { %v23_v6 = vunpack.c.0.s8 %v22_v4  ;;  %s65_s1 = scalar_lea.vmem %s54_s18, 128  ;;  %p70_p1 = scmp.lt.s32.totalorder %s54_s18, %s54_s18 }
   0x6   :  { %33 = vperm.xlu0 %64, %v30_v2   ;;  %p66_p0 = scmp.ne.s32.totalorder %s54_s18, %s65_s1  ;;  %p71_p2 = scmp.lt.s32.totalorder %s65_s1, %s65_s1 }
   0x7   :  { %v26_v8 = vsub.s32 %v23_v6, %v25_v7 }
   0x8   :  { %p72_p3 = por %p71_p2, %p70_p1 }
   0xa   :  { %p73_p4 = pnand %p72_p3, %p66_p0 }
  0x81   :  { %v20_v9 = vpop.permute.xlu0 %19 }
  0x82   :  { %v27_v10 = vrot.slane %v20_v9, %v26_v8 }
  0x84   :  { %v29_v13 = vmul.f32 %v27_v10, %v15_v11 }
  0x85   :  { %v34_v12 = vpop.permute.xlu0 %33 }
  0x86   :  { %v41_v14 = vrot.slane %v34_v12, %v26_v8 }
  0x88   :  { %v43_v15 = vadd.f32 %v41_v14, %v29_v13 }
  0x8a   :  { %v45_v16 = vsel %vm44_vm0, 0.0, %v43_v15 }
  0x8b   :  { %46 = vst [vmem:[#allocation2] sm:$0xff] %v45_v16 }
  0x8c   :  { %76 = shalt.err (!%p73_p4)
}
  0x8d   :  { %s77_s2 = scalar_lea.hbm %s136_s3, 128 }
  0x8e   :  { %p78_p5 = scmp.ne.s32.totalorder %s136_s3, %s77_s2  ;;  %p81_p6 = scmp.lt.u32.totalorder %s77_s2, %s136_s3 }
  0x90   :  { %p83_p7 = pnand %p81_p6, %p78_p5 }
  0x92   :  { %86 = shalt.err (!%p83_p7)
}
  0x93   :  { %56 = dma.vmem_to_hbm [thread:$0]  %s54_s18, 128, %s136_s3, [#allocation3]  }
  0x94   :  { %87 = dma.done.wait [#allocation3], 128  }
  0x95   :  { %88 = vsyncadd [#allocation3], 4294967168 }
  0x96   :  { %60 = vsyncpa [#allocation3], 1 }

</bundles_post_ra>
